<compile_context>
chip_gen: v7x
topology: tpu7x:2x2x1
jax: 0.10.0
libtpu: 0.0.40
codegen_flags: <defaults>
</compile_context>

<pallas_src>
import functools

import jax
import jax.numpy as jnp
from jax.experimental import pallas as pl
from jax.experimental.pallas import tpu as pltpu


def _nll_sum_kernel(preds_ref, tgt_ref, sum_ref, cnt_ref, acc_s, acc_c, *,
                    num_classes, pack, acc_rows):
    """Accumulate masked sum(log p[label]) and valid-row count for one chunk.

    preds_ref: (tile_r, W) log-probs, W = pack * num_classes (lane-dense).
    tgt_ref:   (tile_r, pack) f32; flat in-row lane index (sub*C + label) for
               valid rows, -1.0 for masked / padded rows.
    """
    i = pl.program_id(1)

    @pl.when(i == 0)
    def _init():
        acc_s[...] = jnp.zeros_like(acc_s)
        acc_c[...] = jnp.zeros_like(acc_c)

    preds = preds_ref[...]                       # (tile_r, W) native dtype
    tgt = tgt_ref[...]                           # (tile_r, pack) f32
    tile_r, w = preds.shape

    if pack == 1:
        # (tile_r, 1) broadcasts across lanes in the compare below.
        tgt_exp = tgt
    else:
        # Replicate each sub-row's target across its num_classes-lane segment
        # with a tiny one-hot matmul on the (otherwise idle) MXU. All values
        # are in [-1, W-1] <= 127 so bf16 is exact.
        j_iota = jax.lax.broadcasted_iota(jnp.int32, (pack, w), 1)
        s_iota = jax.lax.broadcasted_iota(jnp.int32, (pack, w), 0)
        lo = s_iota * num_classes
        expand = jnp.where((j_iota >= lo) & (j_iota < lo + num_classes),
                           1.0, 0.0).astype(jnp.bfloat16)      # (pack, W)
        tgt_exp = jnp.dot(tgt.astype(jnp.bfloat16), expand,
                          preferred_element_type=jnp.float32)  # (tile_r, W)

    lane = jax.lax.broadcasted_iota(jnp.int32, (tile_r, w), 1)
    sel = lane == tgt_exp.astype(jnp.int32)      # exactly one lane per valid row

    picked = jnp.where(sel, preds, jnp.zeros_like(preds)).astype(jnp.float32)
    valid = jnp.where(tgt >= 0.0, 1.0, 0.0)      # (tile_r, pack) f32

    # Grouped sums over the leading axis are pure VPU vreg adds (no per-step
    # cross-lane reduction); the scalar reduce happens only in the finalizer.
    g = tile_r // acc_rows
    acc_s[...] += picked.reshape(g, acc_rows, w).sum(axis=0)
    acc_c[...] += valid.reshape(g, acc_rows, pack).sum(axis=0)

    @pl.when(i == pl.num_programs(1) - 1)
    def _finalize():
        nll_sum = -jnp.sum(acc_s[...])
        count = jnp.sum(acc_c[...])
        sum_ref[...] = jnp.full(sum_ref.shape, nll_sum, jnp.float32)
        cnt_ref[...] = jnp.full(cnt_ref.shape, count, jnp.float32)


@functools.partial(jax.jit, static_argnames=("is_sequential",))
def cross_entropy_loss(preds, labels, pad_mask=None, *, is_sequential=True):
    """Pallas implementation of the CrossEntropy module's forward pass."""
    num_classes = preds.shape[-1]
    preds2 = preds.reshape(-1, num_classes)
    labels2 = labels.reshape(-1).astype(jnp.int32)
    if is_sequential:
        mask2 = pad_mask.reshape(-1).astype(jnp.bool_)
    else:
        mask2 = jnp.ones((preds2.shape[0],), dtype=jnp.bool_)

    n_rows = preds2.shape[0]

    # ---- lane-dense repacking for narrow class counts (C < 128) ------------
    if (num_classes < 128 and 128 % num_classes == 0
            and n_rows % (128 // num_classes) == 0):
        pack = 128 // num_classes
    else:
        pack = 1
    w = pack * num_classes
    n_p = n_rows // pack
    preds_p = preds2.reshape(n_p, w)          # contiguous reshape: no HBM copy

    # Compact per-logical-row target: flat lane index within the packed row
    # (sub*C + label) for valid rows, -1 for masked rows.  Small (N,) arrays.
    sub = jnp.arange(n_rows, dtype=jnp.int32) % pack
    tgt = jnp.where(mask2, labels2 + sub * num_classes, -1)
    tgt = tgt.astype(jnp.float32).reshape(n_p, pack)

    # ---- tile / grid selection ----------------------------------------------
    elem_bytes = jnp.dtype(preds_p.dtype).itemsize
    row_bytes = w * elem_bytes
    target_tile_bytes = 6 * 1024 * 1024       # ~6 MiB/tile, double-buffered
    tile_r = max(8, min(8192, (target_tile_bytes // row_bytes) // 8 * 8))
    if n_p < 8:
        tile_r = n_p                          # block == full dim (allowed)
    elif tile_r > n_p:
        tile_r = ((n_p + 7) // 8) * 8
    acc_rows = 8 if tile_r % 8 == 0 else tile_r

    n_chunks = -(-n_p // tile_r)
    n_par = 2 if n_chunks >= 2 else 1         # megacore split (v7x), neutral else
    n_inner = -(-n_chunks // n_par)
    grid_rows = n_par * n_inner * tile_r

    # Only the tiny target array gets padded (mask/pad rows -> -1); the big
    # preds array is never padded or copied.
    if grid_rows > n_p:
        tgt = jnp.pad(tgt, ((0, grid_rows - n_p), (0, 0)), constant_values=-1.0)

    def preds_map(p, i):
        return (jnp.minimum(p * n_inner + i, n_chunks - 1), 0)

    def tgt_map(p, i):
        return (p * n_inner + i, 0)

    kernel = functools.partial(_nll_sum_kernel, num_classes=num_classes,
                               pack=pack, acc_rows=acc_rows)

    sums, cnts = pl.pallas_call(
        kernel,
        out_shape=(jax.ShapeDtypeStruct((n_par, 8, 128), jnp.float32),
                   jax.ShapeDtypeStruct((n_par, 8, 128), jnp.float32)),
        grid_spec=pltpu.PrefetchScalarGridSpec(
            num_scalar_prefetch=0,
            grid=(n_par, n_inner),
            in_specs=[
                pl.BlockSpec((tile_r, w), preds_map),
                pl.BlockSpec((tile_r, pack), tgt_map),
            ],
            out_specs=[
                pl.BlockSpec((1, 8, 128), lambda p, i: (p, 0, 0)),
                pl.BlockSpec((1, 8, 128), lambda p, i: (p, 0, 0)),
            ],
            scratch_shapes=[
                pltpu.VMEM((acc_rows, w), jnp.float32),     # running sum
                pltpu.VMEM((acc_rows, pack), jnp.float32),  # running count
            ],
        ),
        compiler_params=pltpu.CompilerParams(
            dimension_semantics=("parallel", "arbitrary"),
            vmem_limit_bytes=32 * 1024 * 1024,
        ),
    )(preds_p, tgt)

    return sums[:, 0, 0].sum() / cnts[:, 0, 0].sum()


def _reference_loss(preds, labels, pad_mask):
    """Pure-JAX reference matching F.nll_loss(preds[mask], labels[mask])."""
    c = preds.shape[-1]
    p = preds.reshape(-1, c).astype(jnp.float32)
    l = labels.reshape(-1).astype(jnp.int32)
    m = pad_mask.reshape(-1).astype(jnp.float32)
    picked = jnp.take_along_axis(p, l[:, None], axis=-1)[:, 0]
    return jnp.sum(-picked * m) / jnp.sum(m)


if __name__ == "__main__":
    key = jax.random.PRNGKey(0)

    # --- case 1: small shapes, narrow C (packed lane-dense path) ------------
    k1, k2, k3, k4, k5, k6 = jax.random.split(key, 6)
    B, T, C = 2, 8, 32
    logits = jax.random.normal(k1, (B, T, C), dtype=jnp.float32)
    preds = jax.nn.log_softmax(logits, axis=-1)          # NLL expects log-probs
    labels = jax.random.randint(k2, (B, T), 0, C, dtype=jnp.int32)
    pad_mask = jax.random.bernoulli(k3, 0.75, (B, T))
    pad_mask = pad_mask.at[0, 0].set(True)               # ensure >=1 valid row

    loss = cross_entropy_loss(preds, labels, pad_mask, is_sequential=True)
    loss = jax.block_until_ready(loss)
    ref = _reference_loss(preds, labels, pad_mask)
    assert jnp.allclose(loss, ref, atol=1e-5, rtol=1e-5), (loss, ref)

    # --- case 2: larger N, wide C, bf16 streaming, multi-chunk + parallel ----
    B2, T2, C2 = 8, 1024, 512
    logits2 = jax.random.normal(k4, (B2, T2, C2), dtype=jnp.float32)
    preds2 = jax.nn.log_softmax(logits2, axis=-1).astype(jnp.bfloat16)
    labels2 = jax.random.randint(k5, (B2, T2), 0, C2, dtype=jnp.int32)
    pad_mask2 = jax.random.bernoulli(k6, 0.9, (B2, T2))
    pad_mask2 = pad_mask2.at[0, 0].set(True)

    loss2 = cross_entropy_loss(preds2, labels2, pad_mask2, is_sequential=True)
    loss2 = jax.block_until_ready(loss2)
    ref2 = _reference_loss(preds2, labels2, pad_mask2)
    assert jnp.allclose(loss2, ref2, atol=1e-3, rtol=1e-3), (loss2, ref2)

    print("KERNEL_OK")
</pallas_src>

<mosaic_0001>
module attributes {stable_mosaic.version = 11 : i64} {
  func.func @_nll_sum_kernel(%arg0: i32, %arg1: i32, %arg2: memref<4x128xf32, #tpu.memory_space<vmem>>, %arg3: memref<4x4xf32, #tpu.memory_space<vmem>>, %arg4: memref<1x8x128xf32, #tpu.memory_space<vmem>>, %arg5: memref<1x8x128xf32, #tpu.memory_space<vmem>>, %arg6: memref<4x128xf32, #tpu.memory_space<vmem>>, %arg7: memref<4x4xf32, #tpu.memory_space<vmem>>) attributes {dimension_semantics = [#tpu.dimension_semantics<parallel>, #tpu.dimension_semantics<arbitrary>], iteration_bounds = array<i64: 1, 1>, scalar_prefetch = 0 : i64, scratch_operands = 2 : i64, tpu.core_type = #tpu.core_type<tc>, window_params = [{transform_indices = @transform_0, window_bounds = array<i64: 4, 128>}, {transform_indices = @transform_1, window_bounds = array<i64: 4, 4>}, {transform_indices = @transform_2, window_bounds = array<i64: 1, 8, 128>}, {transform_indices = @transform_3, window_bounds = array<i64: 1, 8, 128>}]} {
    %c0_i32 = arith.constant 0 : i32
    %0 = arith.cmpi eq, %arg1, %c0_i32 : i32
    %1 = arith.extui %0 : i1 to i32
    %c0_i32_0 = arith.constant 0 : i32
    %2 = arith.cmpi ne, %1, %c0_i32_0 : i32
    scf.if %2 {
      %cst_23 = arith.constant 0.000000e+00 : f32
      %43 = vector.broadcast %cst_23 : f32 to vector<4x128xf32>
      %c0_24 = arith.constant 0 : index
      %c0_25 = arith.constant 0 : index
      %44 = vector.load %arg6[%c0_24, %c0_25] : memref<4x128xf32, #tpu.memory_space<vmem>>, vector<4x128xf32>
      tpu.vector_store %arg6[%c0_24, %c0_25], %43 {strides = array<i32>} : memref<4x128xf32, #tpu.memory_space<vmem>>, vector<4x128xf32>,
      %cst_26 = arith.constant 0.000000e+00 : f32
      %45 = vector.broadcast %cst_26 : f32 to vector<4x4xf32>
      %c0_27 = arith.constant 0 : index
      %c0_28 = arith.constant 0 : index
      %46 = vector.load %arg7[%c0_27, %c0_28] : memref<4x4xf32, #tpu.memory_space<vmem>>, vector<4x4xf32>
      tpu.vector_store %arg7[%c0_27, %c0_28], %45 {strides = array<i32>} : memref<4x4xf32, #tpu.memory_space<vmem>>, vector<4x4xf32>,
    } else {
    }
    %c0 = arith.constant 0 : index
    %c0_1 = arith.constant 0 : index
    %3 = vector.load %arg2[%c0, %c0_1] : memref<4x128xf32, #tpu.memory_space<vmem>>, vector<4x128xf32>
    %c0_2 = arith.constant 0 : index
    %c0_3 = arith.constant 0 : index
    %4 = vector.load %arg3[%c0_2, %c0_3] : memref<4x4xf32, #tpu.memory_space<vmem>>, vector<4x4xf32>
    %5 = tpu.iota {dimensions = array<i32: 1>} : vector<4x128xi32>
    %6 = tpu.iota {dimensions = array<i32: 0>} : vector<4x128xi32>
    %c32_i32 = arith.constant 32 : i32
    %7 = vector.broadcast %c32_i32 : i32 to vector<4x128xi32>
    %8 = arith.muli %6, %7 : vector<4x128xi32>
    %9 = arith.cmpi sge, %5, %8 : vector<4x128xi32>
    %c32_i32_4 = arith.constant 32 : i32
    %10 = vector.broadcast %c32_i32_4 : i32 to vector<4x128xi32>
    %11 = arith.addi %8, %10 : vector<4x128xi32>
    %12 = arith.cmpi slt, %5, %11 : vector<4x128xi32>
    %13 = arith.andi %9, %12 : vector<4x128xi1>
    %cst = arith.constant 1.000000e+00 : f32
    %cst_5 = arith.constant 0.000000e+00 : f32
    %14 = vector.broadcast %cst : f32 to vector<4x128xf32>
    %15 = vector.broadcast %cst_5 : f32 to vector<4x128xf32>
    %16 = arith.select %13, %14, %15 : vector<4x128xi1>, vector<4x128xf32>
    %17 = arith.truncf %16 : vector<4x128xf32> to vector<4x128xbf16>
    %18 = arith.truncf %4 : vector<4x4xf32> to vector<4x4xbf16>
    %cst_6 = arith.constant dense<0.000000e+00> : vector<4x128xf32>
    %19 = tpu.matmul %18, %17, %cst_6 {dimension_numbers = #tpu.dot_dimension_numbers<[1], [0], [0], [1], [0, 0, 1, 1], [], []>} : vector<4x4xbf16>, vector<4x128xbf16>, vector<4x128xf32> -> vector<4x128xf32>
    %20 = tpu.iota {dimensions = array<i32: 1>} : vector<4x128xi32>
    %21 = arith.fptosi %19 : vector<4x128xf32> to vector<4x128xi32>
    %22 = arith.cmpi eq, %20, %21 : vector<4x128xi32>
    %cst_7 = arith.constant 0.000000e+00 : f32
    %23 = vector.broadcast %cst_7 : f32 to vector<4x128xf32>
    %24 = arith.select %22, %3, %23 : vector<4x128xi1>, vector<4x128xf32>
    %cst_8 = arith.constant 0.000000e+00 : f32
    %25 = vector.broadcast %cst_8 : f32 to vector<4x4xf32>
    %26 = arith.cmpf oge, %4, %25 : vector<4x4xf32>
    %cst_9 = arith.constant 1.000000e+00 : f32
    %cst_10 = arith.constant 0.000000e+00 : f32
    %27 = vector.broadcast %cst_9 : f32 to vector<4x4xf32>
    %28 = vector.broadcast %cst_10 : f32 to vector<4x4xf32>
    %29 = arith.select %26, %27, %28 : vector<4x4xi1>, vector<4x4xf32>
    %c0_11 = arith.constant 0 : index
    %c0_12 = arith.constant 0 : index
    %30 = vector.load %arg6[%c0_11, %c0_12] : memref<4x128xf32, #tpu.memory_space<vmem>>, vector<4x128xf32>
    %31 = vector.shape_cast %24 : vector<4x128xf32> to vector<1x4x128xf32>
    %cst_13 = arith.constant dense<0.000000e+00> : vector<4x128xf32>
    %32 = vector.multi_reduction <add>, %31, %cst_13 [0] : vector<1x4x128xf32> to vector<4x128xf32>
    %33 = arith.addf %30, %32 : vector<4x128xf32>
    %c0_14 = arith.constant 0 : index
    %c0_15 = arith.constant 0 : index
    %34 = vector.load %arg6[%c0_14, %c0_15] : memref<4x128xf32, #tpu.memory_space<vmem>>, vector<4x128xf32>
    tpu.vector_store %arg6[%c0_14, %c0_15], %33 {strides = array<i32>} : memref<4x128xf32, #tpu.memory_space<vmem>>, vector<4x128xf32>,
    %c0_16 = arith.constant 0 : index
    %c0_17 = arith.constant 0 : index
    %35 = vector.load %arg7[%c0_16, %c0_17] : memref<4x4xf32, #tpu.memory_space<vmem>>, vector<4x4xf32>
    %36 = vector.shape_cast %29 : vector<4x4xf32> to vector<1x4x4xf32>
    %cst_18 = arith.constant dense<0.000000e+00> : vector<4x4xf32>
    %37 = vector.multi_reduction <add>, %36, %cst_18 [0] : vector<1x4x4xf32> to vector<4x4xf32>
    %38 = arith.addf %35, %37 : vector<4x4xf32>
    %c0_19 = arith.constant 0 : index
    %c0_20 = arith.constant 0 : index
    %39 = vector.load %arg7[%c0_19, %c0_20] : memref<4x4xf32, #tpu.memory_space<vmem>>, vector<4x4xf32>
    tpu.vector_store %arg7[%c0_19, %c0_20], %38 {strides = array<i32>} : memref<4x4xf32, #tpu.memory_space<vmem>>, vector<4x4xf32>,
    %c0_i32_21 = arith.constant 0 : i32
    %40 = arith.cmpi eq, %arg1, %c0_i32_21 : i32
    %41 = arith.extui %40 : i1 to i32
    %c0_i32_22 = arith.constant 0 : i32
    %42 = arith.cmpi ne, %41, %c0_i32_22 : i32
    scf.if %42 {
      %c0_23 = arith.constant 0 : index
      %c0_24 = arith.constant 0 : index
      %43 = vector.load %arg6[%c0_23, %c0_24] : memref<4x128xf32, #tpu.memory_space<vmem>>, vector<4x128xf32>
      %44 = vector.shape_cast %43 : vector<4x128xf32> to vector<1x4x128xf32>
      %cst_25 = arith.constant dense<0.000000e+00> : vector<1xf32>
      %45 = vector.multi_reduction <add>, %44, %cst_25 [1, 2] : vector<1x4x128xf32> to vector<1xf32>
      %46 = vector.shape_cast %45 : vector<1xf32> to vector<1x1x1xf32>
      %47 = vector.extract %46[0, 0, 0] : f32 from vector<1x1x1xf32>
      %cst_26 = arith.constant 0.000000e+00 : f32
      %48 = arith.subf %cst_26, %47 : f32
      %c0_27 = arith.constant 0 : index
      %c0_28 = arith.constant 0 : index
      %49 = vector.load %arg7[%c0_27, %c0_28] : memref<4x4xf32, #tpu.memory_space<vmem>>, vector<4x4xf32>
      %50 = vector.shape_cast %49 : vector<4x4xf32> to vector<1x4x4xf32>
      %cst_29 = arith.constant dense<0.000000e+00> : vector<1xf32>
      %51 = vector.multi_reduction <add>, %50, %cst_29 [1, 2] : vector<1x4x4xf32> to vector<1xf32>
      %52 = vector.shape_cast %51 : vector<1xf32> to vector<1x1x1xf32>
      %53 = vector.extract %52[0, 0, 0] : f32 from vector<1x1x1xf32>
      %54 = vector.broadcast %48 : f32 to vector<1x8x128xf32>
      %c0_30 = arith.constant 0 : index
      %c0_31 = arith.constant 0 : index
      %c0_32 = arith.constant 0 : index
      %55 = vector.load %arg4[%c0_30, %c0_31, %c0_32] : memref<1x8x128xf32, #tpu.memory_space<vmem>>, vector<1x8x128xf32>
      tpu.vector_store %arg4[%c0_30, %c0_31, %c0_32], %54 {strides = array<i32>} : memref<1x8x128xf32, #tpu.memory_space<vmem>>, vector<1x8x128xf32>,
      %56 = vector.broadcast %53 : f32 to vector<1x8x128xf32>
      %c0_33 = arith.constant 0 : index
      %c0_34 = arith.constant 0 : index
      %c0_35 = arith.constant 0 : index
      %57 = vector.load %arg5[%c0_33, %c0_34, %c0_35] : memref<1x8x128xf32, #tpu.memory_space<vmem>>, vector<1x8x128xf32>
      tpu.vector_store %arg5[%c0_33, %c0_34, %c0_35], %56 {strides = array<i32>} : memref<1x8x128xf32, #tpu.memory_space<vmem>>, vector<1x8x128xf32>,
    } else {
    }
    return
  }
  func.func @transform_0(%arg0: i32, %arg1: i32) -> (i32, i32) {
    %c1_i32 = arith.constant 1 : i32
    %0 = arith.muli %arg0, %c1_i32 : i32
    %1 = arith.addi %0, %arg1 : i32
    %c0_i32 = arith.constant 0 : i32
    %2 = arith.minsi %1, %c0_i32 : i32
    %c0_i32_0 = arith.constant 0 : i32
    %c0_i32_1 = arith.constant 0 : i32
    return %2, %c0_i32_0 : i32, i32
  }
  func.func @transform_1(%arg0: i32, %arg1: i32) -> (i32, i32) {
    %c1_i32 = arith.constant 1 : i32
    %0 = arith.muli %arg0, %c1_i32 : i32
    %1 = arith.addi %0, %arg1 : i32
    %c0_i32 = arith.constant 0 : i32
    %c0_i32_0 = arith.constant 0 : i32
    return %1, %c0_i32 : i32, i32
  }
  func.func @transform_2(%arg0: i32, %arg1: i32) -> (i32, i32, i32) {
    %c0_i32 = arith.constant 0 : i32
    %c0_i32_0 = arith.constant 0 : i32
    %c0_i32_1 = arith.constant 0 : i32
    return %arg0, %c0_i32, %c0_i32_0 : i32, i32, i32
  }
  func.func @transform_3(%arg0: i32, %arg1: i32) -> (i32, i32, i32) {
    %c0_i32 = arith.constant 0 : i32
    %c0_i32_0 = arith.constant 0 : i32
    %c0_i32_1 = arith.constant 0 : i32
    return %arg0, %c0_i32, %c0_i32_0 : i32, i32, i32
  }
}

</mosaic_0001>

<bundles_post_ra>
// kernel: cross_entropy_loss.1
= control target key start
LH: loop header
LB: loop body
LE: loop exit
PB: predicated region body
PF: predicated region fallthrough
CT: control target
= control target key end

     0   :  { %v67_v0 = vlaneseq  ;;  %v209_v1 = vmov 0.0   ;;  %vm210_vm0 = vmmov 0   ;;  %vm83_vm4 = vcmask 1041408   ;;  %s246_s1 = inlined_call_operand.vmem [shape: f32[4,4], index: 1, kind: input, shape index: {}]   ;;  %s247_s0 = inlined_call_operand.vmem [shape: f32[4,128], index: 0, kind: input, shape index: {}]   ;;  %s248_s2 = inlined_call_operand.vmem [shape: f32[1,8,128], index: 2, kind: output, shape index: {0}]   ;;  %s249_s3 = inlined_call_operand.vmem [shape: f32[1,8,128], index: 3, kind: output, shape index: {1}]  }
   0x1   :  { %195 = vmatprep.subr.bf16.mxu0 %v209_v1  ;;  %62 = vst [vmem:[#allocation2] sm:$0xf] %v209_v1  ;;  %197 = vmatprep.mubr.msk.bf16.mxu0 %vm210_vm0, %v209_v1  ;;  %v66_v7 = vld [vmem:[%s246_s1] sm:$0xf]  ;;  %vm79_vm5 = vcmask 31744   ;;  %vm63_vm6 = vcmask 27648  }
   0x2   :  { %v68_v2 = vand.u32 127, %v67_v0  ;;  %v70_v3 = vshrl.u32 %v67_v0, 7  ;;  %v78_v10 = vpack.c.bf16 %v66_v7, %v66_v7  ;;  %64 = vst.msk [vmem:[#allocation3] sm:$0xf] %vm63_vm6, %v209_v1  ;;  %vm130_vm7 = vcmp.ge.f32.partialorder %v66_v7, 0.0 }
   0x3   :  { %v131_v11 = vsel %vm130_vm7, 1.0, %v209_v1  ;;  %v65_v18 = vld [vmem:[%s247_s0] sm:$0xf]  ;;  %vm145_vm9 = vcmask 1043456  }
   0x4   :  { %v71_v4 = vmul.u32 32, %v70_v3 }
   0x6   :  { %vm72_vm1 = vcmp.ge.s32.totalorder %v68_v2, %v71_v4  ;;  %v73_v5 = vadd.s32 32, %v71_v4 }
   0x8   :  { %vm74_vm2 = vcmp.lt.s32.totalorder %v68_v2, %v73_v5  ;;  %v132_v21 = vld [vmem:[#allocation2] sm:$0xf] }
   0x9   :  { %vm75_vm3 = vmand %vm72_vm1, %vm74_vm2  ;;  %v136_v12 = vld [vmem:[#allocation3] sm:$0xf] }
   0xa   :  { %v76_v6 = vsel %vm75_vm3, 1.0, %v209_v1  ;;  %v138_v13 = vadd.f32 %v136_v12, %v131_v11 }
   0xb   :  { %v77_v8 = vpack.c.bf16 %v76_v6, %v76_v6 }
   0xc   :  { %140 = vst.msk [vmem:[#allocation3] sm:$0xf] %vm63_vm6, %v138_v13 }
   0xd   :  { %v85_v9 = vsel %vm83_vm4, %v77_v8, 0 }
   0xe   :  { %196 = vmatpush3.bf16.msra.mxu0 %v85_v9 }
  0x11   :  { %198 = vmatmul.mubr.msk.bf16.vlgmr.msra.gmra.mrb[0].mxu0 %vm79_vm5, %v78_v10 }
  0x13   :  { %v157_v25 = vld [vmem:[#allocation3] sm:$0xf] }
  0x14   :  { %v158_v27 = vsel %vm63_vm6, %v157_v25, 0.0 }
  0xe4   :  { %v121_v14 = vpop.f32.mrb[0].mxu0 }
  0xe5   :  { %v201_v15 = vtrunc.f32 %v121_v14  ;;  %v199_v16 = vpop.f32.mrb[1].mxu0 }
  0xe6   :  { %v124_v17 = vpop.f32.mrb[2].mxu0 }
  0xe7   :  { %v202_v19 = vcvt.f32.s32 %v201_v15  ;;  %v200_v20 = vpop.f32.mrb[3].mxu0 }
  0xe9   :  { %vm128_vm8 = vcmp.eq.s32.totalorder %v68_v2, %v202_v19 }
  0xea   :  { %v129_v22 = vsel %vm128_vm8, %v65_v18, 0.0 }
  0xeb   :  { %v134_v23 = vadd.f32 %v132_v21, %v129_v22 }
  0xed   :  { %135 = vst [vmem:[#allocation2] sm:$0xf] %v134_v23 }
  0xf4   :  { %v144_v24 = vld [vmem:[#allocation2] sm:$0xf] }
  0xf5   :  { %v146_v26 = vsel %vm145_vm9, %v144_v24, 0.0 }
  0xf6   :  { %147 = vadd.xlane.f32.xlu0 %v146_v26 }
  0xfa   :  { %159 = vadd.xlane.f32.xlu0 %v158_v27 }
 0x183   :  { %v148_v28 = vpop.xlane.xlu0 %147 }
 0x184   :  { %v149_v29 = vrot.slane %v148_v28, 4 }
 0x186   :  { %v150_v30 = vadd.f32 %v149_v29, %v148_v28 }
 0x187   :  { %v160_v31 = vpop.xlane.xlu0 %159 }
 0x188   :  { %v151_v32 = vrot.slane %v150_v30, 2  ;;  %v161_v33 = vrot.slane %v160_v31, 4 }
 0x18a   :  { %v162_v34 = vadd.f32 %v161_v33, %v160_v31  ;;  %v152_v35 = vadd.f32 %v151_v32, %v150_v30 }
 0x18c   :  { %v163_v36 = vrot.slane %v162_v34, 2  ;;  %v153_v37 = vrot.slane %v152_v35, 1 }
 0x18e   :  { %v164_v38 = vadd.f32 %v163_v36, %v162_v34  ;;  %v154_v39 = vadd.f32 %v153_v37, %v152_v35 }
 0x190   :  { %203 = vpush %v154_v39  ;;  %v165_v40 = vrot.slane %v164_v38, 1 }
 0x192   :  { %v166_v41 = vadd.f32 %v165_v40, %v164_v38 }
 0x194   :  { %205 = vpush %v166_v41 }
 0x1c1   :  { %s204_s0 = spop %203 }
 0x1c2   :  { %s156_s15 = ssub.f32 0.0, %s204_s0 }
 0x1c4   :  { %v168_v42 = vstv %s156_s15 }
 0x1c5   :  { %169 = vst [vmem:[%s248_s2] sm:$0xff] %v168_v42  ;;  %s206_s18 = spop %205 }
 0x1c6   :  { %v170_v43 = vstv %s206_s18 }
 0x1c7   :  { %171 = vst [vmem:[%s249_s3] sm:$0xff] %v170_v43 }

</bundles_post_ra>
